<compile_context>
chip_gen: v7x
topology: tpu7x:2x2x1
jax: 0.10.0
libtpu: 0.0.40
codegen_flags: <defaults>
</compile_context>

<pallas_src>
import functools

import numpy as np

import jax
import jax.numpy as jnp
from jax.experimental import pallas as pl
from jax.experimental.pallas import tpu as pltpu

_BN_EPS = 1e-5


# ----------------------------------------------------------------------------
# Single fused kernel: initial strided Conv1d + bias, then `convnum` residual
# Conv1dblocks (conv+BN+ReLU, conv+BN+ReLU, +identity).  Everything is kept as
# values (vregs); batches live side by side on the lane axis in zero-haloed
# per-batch slabs, so the halo doubles as the convs' zero padding.
# ----------------------------------------------------------------------------
def _encoderblock_kernel(x_ref, p_ref, w0_ref, b0_ref, wblk_ref, bblk_ref,
                         o_ref, *, pad):
    B, C_in, L = x_ref.shape
    _, C, L_out = o_ref.shape
    K = w0_ref.shape[0]
    convnum = wblk_ref.shape[0]
    Lx = L + 2 * pad            # per-batch width of the initial-conv input slab
    Lh = L_out + 2 * pad        # per-batch width of the block slabs
    Wfull = B * Lx - (K - 1)    # columns of the dense stride-1 initial conv
    Wmid = B * Lh - (K - 1)     # columns of each in-block conv (2*pad == K-1)
    f32 = jnp.float32

    def slab(segments, rows):
        # [pad zeros | segment | pad zeros] per batch, concatenated on the lane axis.
        z = jnp.zeros((rows, pad), f32)
        pieces = []
        for s in segments:
            pieces += ([z, s, z] if pad else [s])
        return pieces[0] if len(pieces) == 1 else jnp.concatenate(pieces, axis=1)

    # ---- initial Conv1d(stride, padding) + bias -------------------------------------
    # Dense per-tap accumulation over the zero-padded slab; the stride (and the
    # per-batch packing) is applied by one matmul with the precomputed 0/1
    # selection matrix P -- no strided loads, no im2col copy of x.
    xslab = slab([x_ref[b].astype(f32) for b in range(B)], C_in)          # (C_in, B*Lx)
    acc = jnp.zeros((C, Wfull), f32)
    for k in range(K):                                                     # acc += chain
        acc = acc + jnp.dot(w0_ref[k], xslab[:, k:k + Wfull],
                            preferred_element_type=f32)
    a0 = jnp.dot(acc, p_ref[...], preferred_element_type=f32) + b0_ref[...]  # (C, B*L_out)

    # activation slab: per-batch zero halos == the stride-1 convs' zero padding
    act = slab([a0[:, b * L_out:(b + 1) * L_out] for b in range(B)], C)      # (C, B*Lh)

    # ---- convnum fused Conv1dblocks ---------------------------------------------------
    # One merged (C, K*C) x (K*C, Wmid) dot per conv; BN already folded into the weights,
    # so the epilogue is just bias + ReLU (+ residual).  Halos stay zero by construction.
    for n in range(convnum):
        cur = act                                     # block input (residual source)
        for half in range(2):
            col = jnp.concatenate([cur[:, k:k + Wmid] for k in range(K)], axis=0)
            y = jnp.dot(wblk_ref[n, half], col, preferred_element_type=f32)
            y = jnp.maximum(y + bblk_ref[n, half], 0.0)                    # (C, Wmid)
            if half == 0:
                cur = slab([y[:, b * Lh:b * Lh + L_out] for b in range(B)], C)
            else:
                act = slab([y[:, b * Lh:b * Lh + L_out]
                            + act[:, b * Lh + pad:b * Lh + pad + L_out]
                            for b in range(B)], C)

    for b in range(B):
        o_ref[b] = act[:, b * Lh + pad:b * Lh + pad + L_out].astype(o_ref.dtype)


# ----------------------------------------------------------------------------
# One-time parameter preparation: BN folding + kernel weight layouts.
# ----------------------------------------------------------------------------
def _fold_bn_into_conv(w, conv_b, gamma, beta, mean, var):
    """Fold eval-mode BN into a conv.  Returns (C_out, K*C_in) weight, (C_out, 1) bias."""
    scale = gamma / jnp.sqrt(var + _BN_EPS)                       # (C_out,)
    w_f = (w * scale[:, None, None]).astype(jnp.float32)          # (C_out, C_in, K)
    b_f = (beta + (conv_b - mean) * scale).astype(jnp.float32)    # (C_out,)
    C_out, C_in, K = w.shape
    # row order of the in-kernel `col` stack is [k*C_in + ci]
    w_flat = jnp.transpose(w_f, (0, 2, 1)).reshape(C_out, K * C_in)
    return w_flat, b_f.reshape(C_out, 1)


def prepare_encoderblock_params(params):
    """One-time BN fold + layout prep (kept off the forward path, per review)."""
    assert len(params["blocks"]) >= 1, "Encoderblock with convnum == 0 not supported"
    arrays = {
        "w0": jnp.transpose(params["conv0_w"], (2, 0, 1)).astype(jnp.float32),  # (K,C_out,C_in)
        "b0": params["conv0_b"].reshape(-1, 1).astype(jnp.float32),             # (C_out,1)
    }
    wb, bb = [], []
    for blk in params["blocks"]:
        w1, b1 = _fold_bn_into_conv(blk["w1"], blk["b1"], blk["bn1_gamma"],
                                    blk["bn1_beta"], blk["bn1_mean"], blk["bn1_var"])
        w2, b2 = _fold_bn_into_conv(blk["w2"], blk["b2"], blk["bn2_gamma"],
                                    blk["bn2_beta"], blk["bn2_mean"], blk["bn2_var"])
        wb.append(jnp.stack([w1, w2]))
        bb.append(jnp.stack([b1, b2]))
    arrays["wblk"] = jnp.stack(wb)      # (convnum, 2, C_out, K*C_out)
    arrays["bblk"] = jnp.stack(bb)      # (convnum, 2, C_out, 1)
    return arrays


def encoderblock_forward(arrays, x, *, stride, padding):
    """x: (B, in_channel, L) -> (B, out_channel, L_out).  One fused pallas_call."""
    B, C_in, L = x.shape
    K, C_out, _ = arrays["w0"].shape
    convnum = arrays["wblk"].shape[0]
    pad = padding
    L_out = (L + 2 * pad - K) // stride + 1
    assert L_out >= 1, "input too short for the initial conv"
    # PyTorch's in-block residual add requires the stride-1 convs to preserve length.
    assert 2 * pad == K - 1, "Conv1dblock residual needs 2*padding == kersize-1"

    # 0/1 column-selection matrix folding the initial conv's stride (and the lane-axis
    # batch packing) into one matmul.  Built from static shapes -> compile-time constant.
    Lx = L + 2 * pad
    Wfull = B * Lx - (K - 1)
    sel = np.zeros((Wfull, B * L_out), np.float32)
    for b in range(B):
        for j in range(L_out):
            sel[b * Lx + j * stride, b * L_out + j] = 1.0   # < Wfull by construction

    return pl.pallas_call(
        functools.partial(_encoderblock_kernel, pad=pad),
        out_shape=jax.ShapeDtypeStruct((B, C_out, L_out), jnp.float32),
        grid=(1,),
        in_specs=[
            pl.BlockSpec((B, C_in, L), lambda i: (0, 0, 0)),
            pl.BlockSpec((Wfull, B * L_out), lambda i: (0, 0)),
            pl.BlockSpec((K, C_out, C_in), lambda i: (0, 0, 0)),
            pl.BlockSpec((C_out, 1), lambda i: (0, 0)),
            pl.BlockSpec((convnum, 2, C_out, K * C_out), lambda i: (0, 0, 0, 0)),
            pl.BlockSpec((convnum, 2, C_out, 1), lambda i: (0, 0, 0, 0)),
        ],
        out_specs=pl.BlockSpec((B, C_out, L_out), lambda i: (0, 0, 0)),
        compiler_params=pltpu.CompilerParams(
            dimension_semantics=("arbitrary",)),
    )(x.astype(jnp.float32), jnp.asarray(sel), arrays["w0"], arrays["b0"],
      arrays["wblk"], arrays["bblk"])


# ----------------------------------------------------------------------------
# Deterministic synthetic parameters + pure-JAX reference for a sanity check.
# ----------------------------------------------------------------------------
def init_encoderblock_params(key, convnum, in_channel, out_channel, kersize):
    ks = jax.random.split(key, 1 + convnum)
    p = {}
    k0a, k0b = jax.random.split(ks[0])
    p["conv0_w"] = jax.random.normal(k0a, (out_channel, in_channel, kersize),
                                     jnp.float32) * 0.1
    p["conv0_b"] = jax.random.normal(k0b, (out_channel,), jnp.float32) * 0.1
    p["blocks"] = []
    for i in range(convnum):
        sub = jax.random.split(ks[1 + i], 12)
        blk = {}
        for j, name in enumerate(["w1", "b1", "w2", "b2"]):
            shape = ((out_channel, out_channel, kersize) if name.startswith("w")
                     else (out_channel,))
            blk[name] = jax.random.normal(sub[j], shape, jnp.float32) * 0.1
        for bn, base in (("bn1", 4), ("bn2", 8)):
            blk[bn + "_gamma"] = 1.0 + 0.1 * jax.random.normal(
                sub[base + 0], (out_channel,), jnp.float32)
            blk[bn + "_beta"] = 0.1 * jax.random.normal(
                sub[base + 1], (out_channel,), jnp.float32)
            blk[bn + "_mean"] = 0.1 * jax.random.normal(
                sub[base + 2], (out_channel,), jnp.float32)
            blk[bn + "_var"] = 0.5 + jax.random.uniform(
                sub[base + 3], (out_channel,), jnp.float32)
        p["blocks"].append(blk)
    return p


def _ref_conv1d(x, w, b, stride, padding):
    out = jax.lax.conv_general_dilated(
        x, w, window_strides=(stride,), padding=[(padding, padding)],
        dimension_numbers=("NCH", "OIH", "NCH"))
    return out + b[None, :, None]


def _ref_forward(params, x, *, stride, padding):
    y = _ref_conv1d(x, params["conv0_w"], params["conv0_b"], stride, padding)
    for blk in params["blocks"]:
        res = y
        h = _ref_conv1d(y, blk["w1"], blk["b1"], 1, padding)
        h = ((h - blk["bn1_mean"][None, :, None])
             / jnp.sqrt(blk["bn1_var"][None, :, None] + _BN_EPS)
             * blk["bn1_gamma"][None, :, None] + blk["bn1_beta"][None, :, None])
        h = jnp.maximum(h, 0.0)
        h = _ref_conv1d(h, blk["w2"], blk["b2"], 1, padding)
        h = ((h - blk["bn2_mean"][None, :, None])
             / jnp.sqrt(blk["bn2_var"][None, :, None] + _BN_EPS)
             * blk["bn2_gamma"][None, :, None] + blk["bn2_beta"][None, :, None])
        h = jnp.maximum(h, 0.0)
        y = h + res
    return y


if __name__ == "__main__":
    # Encoderblock(convnum=2, in_channel=4, out_channel=8, kersize=3, stride=2, padding=1)
    B, C_IN, L = 2, 4, 16
    C_OUT, K, STRIDE, PAD, CONVNUM = 8, 3, 2, 1, 2

    key = jax.random.PRNGKey(0)
    kx, kp = jax.random.split(key)
    x = jax.random.normal(kx, (B, C_IN, L), jnp.float32)          # NCL, like PyTorch
    params = init_encoderblock_params(kp, CONVNUM, C_IN, C_OUT, K)

    arrays = prepare_encoderblock_params(params)                  # one-time prep
    fwd = jax.jit(functools.partial(encoderblock_forward, stride=STRIDE, padding=PAD))
    out = jax.block_until_ready(fwd(arrays, x))

    ref = jax.block_until_ready(_ref_forward(params, x, stride=STRIDE, padding=PAD))
    assert out.shape == ref.shape == (B, C_OUT, (L + 2 * PAD - K) // STRIDE + 1)
    assert jnp.allclose(out, ref, rtol=1e-4, atol=1e-4), "mismatch vs reference"

    print("KERNEL_OK")
</pallas_src>

<mosaic_0001>
module attributes {stable_mosaic.version = 11 : i64} {
  func.func @_encoderblock_kernel(%arg0: i32, %arg1: memref<2x4x16xf32, #tpu.memory_space<vmem>>, %arg2: memref<34x16xf32, #tpu.memory_space<vmem>>, %arg3: memref<3x8x4xf32, #tpu.memory_space<vmem>>, %arg4: memref<8x1xf32, #tpu.memory_space<vmem>>, %arg5: memref<2x2x8x24xf32, #tpu.memory_space<vmem>>, %arg6: memref<2x2x8x1xf32, #tpu.memory_space<vmem>>, %arg7: memref<2x8x8xf32, #tpu.memory_space<vmem>>) attributes {dimension_semantics = [#tpu.dimension_semantics<arbitrary>], iteration_bounds = array<i64: 1>, scalar_prefetch = 0 : i64, scratch_operands = 0 : i64, tpu.core_type = #tpu.core_type<tc>, window_params = [{pipeline_mode = #tpu.pipeline_mode<synchronous>, transform_indices = @transform_0, window_bounds = array<i64: 2, 4, 16>}, {pipeline_mode = #tpu.pipeline_mode<synchronous>, transform_indices = @transform_1, window_bounds = array<i64: 34, 16>}, {pipeline_mode = #tpu.pipeline_mode<synchronous>, transform_indices = @transform_2, window_bounds = array<i64: 3, 8, 4>}, {pipeline_mode = #tpu.pipeline_mode<synchronous>, transform_indices = @transform_3, window_bounds = array<i64: 8, 1>}, {pipeline_mode = #tpu.pipeline_mode<synchronous>, transform_indices = @transform_4, window_bounds = array<i64: 2, 2, 8, 24>}, {pipeline_mode = #tpu.pipeline_mode<synchronous>, transform_indices = @transform_5, window_bounds = array<i64: 2, 2, 8, 1>}, {pipeline_mode = #tpu.pipeline_mode<synchronous>, transform_indices = @transform_6, window_bounds = array<i64: 2, 8, 8>}]} {
    %c0 = arith.constant 0 : index
    %c0_0 = arith.constant 0 : index
    %c0_1 = arith.constant 0 : index
    %0 = vector.load %arg1[%c0, %c0_0, %c0_1] : memref<2x4x16xf32, #tpu.memory_space<vmem>>, vector<1x4x16xf32>
    %1 = vector.shape_cast %0 : vector<1x4x16xf32> to vector<4x16xf32>
    %c1 = arith.constant 1 : index
    %c0_2 = arith.constant 0 : index
    %c0_3 = arith.constant 0 : index
    %2 = vector.load %arg1[%c1, %c0_2, %c0_3] : memref<2x4x16xf32, #tpu.memory_space<vmem>>, vector<1x4x16xf32>
    %3 = vector.shape_cast %2 : vector<1x4x16xf32> to vector<4x16xf32>
    %cst = arith.constant 0.000000e+00 : f32
    %4 = vector.broadcast %cst : f32 to vector<4x1xf32>
    %5 = tpu.concatenate %4, %1, %4, %4, %3, %4 in 1 : vector<4x1xf32>, vector<4x16xf32>, vector<4x1xf32>, vector<4x1xf32>, vector<4x16xf32>, vector<4x1xf32> -> vector<4x36xf32>
    %cst_4 = arith.constant 0.000000e+00 : f32
    %6 = vector.broadcast %cst_4 : f32 to vector<8x34xf32>
    %c0_5 = arith.constant 0 : index
    %c0_6 = arith.constant 0 : index
    %c0_7 = arith.constant 0 : index
    %7 = vector.load %arg3[%c0_5, %c0_6, %c0_7] : memref<3x8x4xf32, #tpu.memory_space<vmem>>, vector<1x8x4xf32>
    %8 = vector.shape_cast %7 : vector<1x8x4xf32> to vector<8x4xf32>
    %9 = vector.extract_strided_slice %5 {offsets = [0, 0], sizes = [4, 34], strides = [1, 1]} : vector<4x36xf32> to vector<4x34xf32>
    %cst_8 = arith.constant dense<0.000000e+00> : vector<8x34xf32>
    %10 = tpu.matmul %8, %9, %cst_8 {dimension_numbers = #tpu.dot_dimension_numbers<[1], [0], [0], [1], [0, 0, 1, 1], [], []>} : vector<8x4xf32>, vector<4x34xf32>, vector<8x34xf32> -> vector<8x34xf32>
    %11 = arith.addf %6, %10 : vector<8x34xf32>
    %c1_9 = arith.constant 1 : index
    %c0_10 = arith.constant 0 : index
    %c0_11 = arith.constant 0 : index
    %12 = vector.load %arg3[%c1_9, %c0_10, %c0_11] : memref<3x8x4xf32, #tpu.memory_space<vmem>>, vector<1x8x4xf32>
    %13 = vector.shape_cast %12 : vector<1x8x4xf32> to vector<8x4xf32>
    %14 = vector.extract_strided_slice %5 {offsets = [0, 1], sizes = [4, 34], strides = [1, 1]} : vector<4x36xf32> to vector<4x34xf32>
    %cst_12 = arith.constant dense<0.000000e+00> : vector<8x34xf32>
    %15 = tpu.matmul %13, %14, %cst_12 {dimension_numbers = #tpu.dot_dimension_numbers<[1], [0], [0], [1], [0, 0, 1, 1], [], []>} : vector<8x4xf32>, vector<4x34xf32>, vector<8x34xf32> -> vector<8x34xf32>
    %16 = arith.addf %11, %15 : vector<8x34xf32>
    %c2 = arith.constant 2 : index
    %c0_13 = arith.constant 0 : index
    %c0_14 = arith.constant 0 : index
    %17 = vector.load %arg3[%c2, %c0_13, %c0_14] : memref<3x8x4xf32, #tpu.memory_space<vmem>>, vector<1x8x4xf32>
    %18 = vector.shape_cast %17 : vector<1x8x4xf32> to vector<8x4xf32>
    %19 = vector.extract_strided_slice %5 {offsets = [0, 2], sizes = [4, 34], strides = [1, 1]} : vector<4x36xf32> to vector<4x34xf32>
    %cst_15 = arith.constant dense<0.000000e+00> : vector<8x34xf32>
    %20 = tpu.matmul %18, %19, %cst_15 {dimension_numbers = #tpu.dot_dimension_numbers<[1], [0], [0], [1], [0, 0, 1, 1], [], []>} : vector<8x4xf32>, vector<4x34xf32>, vector<8x34xf32> -> vector<8x34xf32>
    %21 = arith.addf %16, %20 : vector<8x34xf32>
    %c0_16 = arith.constant 0 : index
    %c0_17 = arith.constant 0 : index
    %22 = vector.load %arg2[%c0_16, %c0_17] : memref<34x16xf32, #tpu.memory_space<vmem>>, vector<34x16xf32>
    %cst_18 = arith.constant dense<0.000000e+00> : vector<8x16xf32>
    %23 = tpu.matmul %21, %22, %cst_18 {dimension_numbers = #tpu.dot_dimension_numbers<[1], [0], [0], [1], [0, 0, 1, 1], [], []>} : vector<8x34xf32>, vector<34x16xf32>, vector<8x16xf32> -> vector<8x16xf32>
    %c0_19 = arith.constant 0 : index
    %c0_20 = arith.constant 0 : index
    %24 = vector.load %arg4[%c0_19, %c0_20] : memref<8x1xf32, #tpu.memory_space<vmem>>, vector<8x1xf32>
    %25 = vector.broadcast %24 : vector<8x1xf32> to vector<8x16xf32>
    %26 = arith.addf %23, %25 : vector<8x16xf32>
    %27 = vector.extract_strided_slice %26 {offsets = [0, 0], sizes = [8, 8], strides = [1, 1]} : vector<8x16xf32> to vector<8x8xf32>
    %28 = vector.extract_strided_slice %26 {offsets = [0, 8], sizes = [8, 8], strides = [1, 1]} : vector<8x16xf32> to vector<8x8xf32>
    %cst_21 = arith.constant 0.000000e+00 : f32
    %29 = vector.broadcast %cst_21 : f32 to vector<8x1xf32>
    %30 = tpu.concatenate %29, %27, %29, %29, %28, %29 in 1 : vector<8x1xf32>, vector<8x8xf32>, vector<8x1xf32>, vector<8x1xf32>, vector<8x8xf32>, vector<8x1xf32> -> vector<8x20xf32>
    %31 = vector.extract_strided_slice %30 {offsets = [0, 0], sizes = [8, 18], strides = [1, 1]} : vector<8x20xf32> to vector<8x18xf32>
    %32 = vector.extract_strided_slice %30 {offsets = [0, 1], sizes = [8, 18], strides = [1, 1]} : vector<8x20xf32> to vector<8x18xf32>
    %33 = vector.extract_strided_slice %30 {offsets = [0, 2], sizes = [8, 18], strides = [1, 1]} : vector<8x20xf32> to vector<8x18xf32>
    %34 = tpu.concatenate %31, %32, %33 in 0 : vector<8x18xf32>, vector<8x18xf32>, vector<8x18xf32> -> vector<24x18xf32>
    %c0_22 = arith.constant 0 : index
    %c0_23 = arith.constant 0 : index
    %c0_24 = arith.constant 0 : index
    %c0_25 = arith.constant 0 : index
    %35 = vector.load %arg5[%c0_22, %c0_23, %c0_24, %c0_25] : memref<2x2x8x24xf32, #tpu.memory_space<vmem>>, vector<1x1x8x24xf32>
    %36 = vector.shape_cast %35 : vector<1x1x8x24xf32> to vector<8x24xf32>
    %cst_26 = arith.constant dense<0.000000e+00> : vector<8x18xf32>
    %37 = tpu.matmul %36, %34, %cst_26 {dimension_numbers = #tpu.dot_dimension_numbers<[1], [0], [0], [1], [0, 0, 1, 1], [], []>} : vector<8x24xf32>, vector<24x18xf32>, vector<8x18xf32> -> vector<8x18xf32>
    %c0_27 = arith.constant 0 : index
    %c0_28 = arith.constant 0 : index
    %c0_29 = arith.constant 0 : index
    %c0_30 = arith.constant 0 : index
    %38 = vector.load %arg6[%c0_27, %c0_28, %c0_29, %c0_30] : memref<2x2x8x1xf32, #tpu.memory_space<vmem>>, vector<1x1x8x1xf32>
    %39 = vector.shape_cast %38 : vector<1x1x8x1xf32> to vector<8x1xf32>
    %40 = vector.broadcast %39 : vector<8x1xf32> to vector<8x18xf32>
    %41 = arith.addf %37, %40 : vector<8x18xf32>
    %cst_31 = arith.constant 0.000000e+00 : f32
    %42 = vector.broadcast %cst_31 : f32 to vector<8x18xf32>
    %43 = arith.maximumf %41, %42 : vector<8x18xf32>
    %44 = vector.extract_strided_slice %43 {offsets = [0, 0], sizes = [8, 8], strides = [1, 1]} : vector<8x18xf32> to vector<8x8xf32>
    %45 = vector.extract_strided_slice %43 {offsets = [0, 10], sizes = [8, 8], strides = [1, 1]} : vector<8x18xf32> to vector<8x8xf32>
    %cst_32 = arith.constant 0.000000e+00 : f32
    %46 = vector.broadcast %cst_32 : f32 to vector<8x1xf32>
    %47 = tpu.concatenate %46, %44, %46, %46, %45, %46 in 1 : vector<8x1xf32>, vector<8x8xf32>, vector<8x1xf32>, vector<8x1xf32>, vector<8x8xf32>, vector<8x1xf32> -> vector<8x20xf32>
    %48 = vector.extract_strided_slice %47 {offsets = [0, 0], sizes = [8, 18], strides = [1, 1]} : vector<8x20xf32> to vector<8x18xf32>
    %49 = vector.extract_strided_slice %47 {offsets = [0, 1], sizes = [8, 18], strides = [1, 1]} : vector<8x20xf32> to vector<8x18xf32>
    %50 = vector.extract_strided_slice %47 {offsets = [0, 2], sizes = [8, 18], strides = [1, 1]} : vector<8x20xf32> to vector<8x18xf32>
    %51 = tpu.concatenate %48, %49, %50 in 0 : vector<8x18xf32>, vector<8x18xf32>, vector<8x18xf32> -> vector<24x18xf32>
    %c0_33 = arith.constant 0 : index
    %c1_34 = arith.constant 1 : index
    %c0_35 = arith.constant 0 : index
    %c0_36 = arith.constant 0 : index
    %52 = vector.load %arg5[%c0_33, %c1_34, %c0_35, %c0_36] : memref<2x2x8x24xf32, #tpu.memory_space<vmem>>, vector<1x1x8x24xf32>
    %53 = vector.shape_cast %52 : vector<1x1x8x24xf32> to vector<8x24xf32>
    %cst_37 = arith.constant dense<0.000000e+00> : vector<8x18xf32>
    %54 = tpu.matmul %53, %51, %cst_37 {dimension_numbers = #tpu.dot_dimension_numbers<[1], [0], [0], [1], [0, 0, 1, 1], [], []>} : vector<8x24xf32>, vector<24x18xf32>, vector<8x18xf32> -> vector<8x18xf32>
    %c0_38 = arith.constant 0 : index
    %c1_39 = arith.constant 1 : index
    %c0_40 = arith.constant 0 : index
    %c0_41 = arith.constant 0 : index
    %55 = vector.load %arg6[%c0_38, %c1_39, %c0_40, %c0_41] : memref<2x2x8x1xf32, #tpu.memory_space<vmem>>, vector<1x1x8x1xf32>
    %56 = vector.shape_cast %55 : vector<1x1x8x1xf32> to vector<8x1xf32>
    %57 = vector.broadcast %56 : vector<8x1xf32> to vector<8x18xf32>
    %58 = arith.addf %54, %57 : vector<8x18xf32>
    %cst_42 = arith.constant 0.000000e+00 : f32
    %59 = vector.broadcast %cst_42 : f32 to vector<8x18xf32>
    %60 = arith.maximumf %58, %59 : vector<8x18xf32>
    %61 = vector.extract_strided_slice %60 {offsets = [0, 0], sizes = [8, 8], strides = [1, 1]} : vector<8x18xf32> to vector<8x8xf32>
    %62 = vector.extract_strided_slice %30 {offsets = [0, 1], sizes = [8, 8], strides = [1, 1]} : vector<8x20xf32> to vector<8x8xf32>
    %63 = arith.addf %61, %62 : vector<8x8xf32>
    %64 = vector.extract_strided_slice %60 {offsets = [0, 10], sizes = [8, 8], strides = [1, 1]} : vector<8x18xf32> to vector<8x8xf32>
    %65 = vector.extract_strided_slice %30 {offsets = [0, 11], sizes = [8, 8], strides = [1, 1]} : vector<8x20xf32> to vector<8x8xf32>
    %66 = arith.addf %64, %65 : vector<8x8xf32>
    %cst_43 = arith.constant 0.000000e+00 : f32
    %67 = vector.broadcast %cst_43 : f32 to vector<8x1xf32>
    %68 = tpu.concatenate %67, %63, %67, %67, %66, %67 in 1 : vector<8x1xf32>, vector<8x8xf32>, vector<8x1xf32>, vector<8x1xf32>, vector<8x8xf32>, vector<8x1xf32> -> vector<8x20xf32>
    %69 = vector.extract_strided_slice %68 {offsets = [0, 0], sizes = [8, 18], strides = [1, 1]} : vector<8x20xf32> to vector<8x18xf32>
    %70 = vector.extract_strided_slice %68 {offsets = [0, 1], sizes = [8, 18], strides = [1, 1]} : vector<8x20xf32> to vector<8x18xf32>
    %71 = vector.extract_strided_slice %68 {offsets = [0, 2], sizes = [8, 18], strides = [1, 1]} : vector<8x20xf32> to vector<8x18xf32>
    %72 = tpu.concatenate %69, %70, %71 in 0 : vector<8x18xf32>, vector<8x18xf32>, vector<8x18xf32> -> vector<24x18xf32>
    %c1_44 = arith.constant 1 : index
    %c0_45 = arith.constant 0 : index
    %c0_46 = arith.constant 0 : index
    %c0_47 = arith.constant 0 : index
    %73 = vector.load %arg5[%c1_44, %c0_45, %c0_46, %c0_47] : memref<2x2x8x24xf32, #tpu.memory_space<vmem>>, vector<1x1x8x24xf32>
    %74 = vector.shape_cast %73 : vector<1x1x8x24xf32> to vector<8x24xf32>
    %cst_48 = arith.constant dense<0.000000e+00> : vector<8x18xf32>
    %75 = tpu.matmul %74, %72, %cst_48 {dimension_numbers = #tpu.dot_dimension_numbers<[1], [0], [0], [1], [0, 0, 1, 1], [], []>} : vector<8x24xf32>, vector<24x18xf32>, vector<8x18xf32> -> vector<8x18xf32>
    %c1_49 = arith.constant 1 : index
    %c0_50 = arith.constant 0 : index
    %c0_51 = arith.constant 0 : index
    %c0_52 = arith.constant 0 : index
    %76 = vector.load %arg6[%c1_49, %c0_50, %c0_51, %c0_52] : memref<2x2x8x1xf32, #tpu.memory_space<vmem>>, vector<1x1x8x1xf32>
    %77 = vector.shape_cast %76 : vector<1x1x8x1xf32> to vector<8x1xf32>
    %78 = vector.broadcast %77 : vector<8x1xf32> to vector<8x18xf32>
    %79 = arith.addf %75, %78 : vector<8x18xf32>
    %cst_53 = arith.constant 0.000000e+00 : f32
    %80 = vector.broadcast %cst_53 : f32 to vector<8x18xf32>
    %81 = arith.maximumf %79, %80 : vector<8x18xf32>
    %82 = vector.extract_strided_slice %81 {offsets = [0, 0], sizes = [8, 8], strides = [1, 1]} : vector<8x18xf32> to vector<8x8xf32>
    %83 = vector.extract_strided_slice %81 {offsets = [0, 10], sizes = [8, 8], strides = [1, 1]} : vector<8x18xf32> to vector<8x8xf32>
    %cst_54 = arith.constant 0.000000e+00 : f32
    %84 = vector.broadcast %cst_54 : f32 to vector<8x1xf32>
    %85 = tpu.concatenate %84, %82, %84, %84, %83, %84 in 1 : vector<8x1xf32>, vector<8x8xf32>, vector<8x1xf32>, vector<8x1xf32>, vector<8x8xf32>, vector<8x1xf32> -> vector<8x20xf32>
    %86 = vector.extract_strided_slice %85 {offsets = [0, 0], sizes = [8, 18], strides = [1, 1]} : vector<8x20xf32> to vector<8x18xf32>
    %87 = vector.extract_strided_slice %85 {offsets = [0, 1], sizes = [8, 18], strides = [1, 1]} : vector<8x20xf32> to vector<8x18xf32>
    %88 = vector.extract_strided_slice %85 {offsets = [0, 2], sizes = [8, 18], strides = [1, 1]} : vector<8x20xf32> to vector<8x18xf32>
    %89 = tpu.concatenate %86, %87, %88 in 0 : vector<8x18xf32>, vector<8x18xf32>, vector<8x18xf32> -> vector<24x18xf32>
    %c1_55 = arith.constant 1 : index
    %c1_56 = arith.constant 1 : index
    %c0_57 = arith.constant 0 : index
    %c0_58 = arith.constant 0 : index
    %90 = vector.load %arg5[%c1_55, %c1_56, %c0_57, %c0_58] : memref<2x2x8x24xf32, #tpu.memory_space<vmem>>, vector<1x1x8x24xf32>
    %91 = vector.shape_cast %90 : vector<1x1x8x24xf32> to vector<8x24xf32>
    %cst_59 = arith.constant dense<0.000000e+00> : vector<8x18xf32>
    %92 = tpu.matmul %91, %89, %cst_59 {dimension_numbers = #tpu.dot_dimension_numbers<[1], [0], [0], [1], [0, 0, 1, 1], [], []>} : vector<8x24xf32>, vector<24x18xf32>, vector<8x18xf32> -> vector<8x18xf32>
    %c1_60 = arith.constant 1 : index
    %c1_61 = arith.constant 1 : index
    %c0_62 = arith.constant 0 : index
    %c0_63 = arith.constant 0 : index
    %93 = vector.load %arg6[%c1_60, %c1_61, %c0_62, %c0_63] : memref<2x2x8x1xf32, #tpu.memory_space<vmem>>, vector<1x1x8x1xf32>
    %94 = vector.shape_cast %93 : vector<1x1x8x1xf32> to vector<8x1xf32>
    %95 = vector.broadcast %94 : vector<8x1xf32> to vector<8x18xf32>
    %96 = arith.addf %92, %95 : vector<8x18xf32>
    %cst_64 = arith.constant 0.000000e+00 : f32
    %97 = vector.broadcast %cst_64 : f32 to vector<8x18xf32>
    %98 = arith.maximumf %96, %97 : vector<8x18xf32>
    %99 = vector.extract_strided_slice %98 {offsets = [0, 0], sizes = [8, 8], strides = [1, 1]} : vector<8x18xf32> to vector<8x8xf32>
    %100 = vector.extract_strided_slice %68 {offsets = [0, 1], sizes = [8, 8], strides = [1, 1]} : vector<8x20xf32> to vector<8x8xf32>
    %101 = arith.addf %99, %100 : vector<8x8xf32>
    %102 = vector.extract_strided_slice %98 {offsets = [0, 10], sizes = [8, 8], strides = [1, 1]} : vector<8x18xf32> to vector<8x8xf32>
    %103 = vector.extract_strided_slice %68 {offsets = [0, 11], sizes = [8, 8], strides = [1, 1]} : vector<8x20xf32> to vector<8x8xf32>
    %104 = arith.addf %102, %103 : vector<8x8xf32>
    %cst_65 = arith.constant 0.000000e+00 : f32
    %105 = vector.broadcast %cst_65 : f32 to vector<8x1xf32>
    %106 = tpu.concatenate %105, %101, %105, %105, %104, %105 in 1 : vector<8x1xf32>, vector<8x8xf32>, vector<8x1xf32>, vector<8x1xf32>, vector<8x8xf32>, vector<8x1xf32> -> vector<8x20xf32>
    %107 = vector.extract_strided_slice %106 {offsets = [0, 1], sizes = [8, 8], strides = [1, 1]} : vector<8x20xf32> to vector<8x8xf32>
    %c0_66 = arith.constant 0 : index
    %c0_67 = arith.constant 0 : index
    %c0_68 = arith.constant 0 : index
    %108 = vector.load %arg7[%c0_66, %c0_67, %c0_68] : memref<2x8x8xf32, #tpu.memory_space<vmem>>, vector<1x8x8xf32>
    %109 = vector.shape_cast %108 : vector<1x8x8xf32> to vector<8x8xf32>
    %110 = vector.shape_cast %107 : vector<8x8xf32> to vector<1x8x8xf32>
    tpu.vector_store %arg7[%c0_66, %c0_67, %c0_68], %110 {strides = array<i32>} : memref<2x8x8xf32, #tpu.memory_space<vmem>>, vector<1x8x8xf32>,
    %111 = vector.extract_strided_slice %106 {offsets = [0, 11], sizes = [8, 8], strides = [1, 1]} : vector<8x20xf32> to vector<8x8xf32>
    %c1_69 = arith.constant 1 : index
    %c0_70 = arith.constant 0 : index
    %c0_71 = arith.constant 0 : index
    %112 = vector.load %arg7[%c1_69, %c0_70, %c0_71] : memref<2x8x8xf32, #tpu.memory_space<vmem>>, vector<1x8x8xf32>
    %113 = vector.shape_cast %112 : vector<1x8x8xf32> to vector<8x8xf32>
    %114 = vector.shape_cast %111 : vector<8x8xf32> to vector<1x8x8xf32>
    tpu.vector_store %arg7[%c1_69, %c0_70, %c0_71], %114 {strides = array<i32>} : memref<2x8x8xf32, #tpu.memory_space<vmem>>, vector<1x8x8xf32>,
    return
  }
  func.func @transform_0(%arg0: i32) -> (i32, i32, i32) {
    %c0_i32 = arith.constant 0 : i32
    %c0_i32_0 = arith.constant 0 : i32
    %c0_i32_1 = arith.constant 0 : i32
    %c0_i32_2 = arith.constant 0 : i32
    return %c0_i32, %c0_i32_0, %c0_i32_1 : i32, i32, i32
  }
  func.func @transform_1(%arg0: i32) -> (i32, i32) {
    %c0_i32 = arith.constant 0 : i32
    %c0_i32_0 = arith.constant 0 : i32
    %c0_i32_1 = arith.constant 0 : i32
    return %c0_i32, %c0_i32_0 : i32, i32
  }
  func.func @transform_2(%arg0: i32) -> (i32, i32, i32) {
    %c0_i32 = arith.constant 0 : i32
    %c0_i32_0 = arith.constant 0 : i32
    %c0_i32_1 = arith.constant 0 : i32
    %c0_i32_2 = arith.constant 0 : i32
    return %c0_i32, %c0_i32_0, %c0_i32_1 : i32, i32, i32
  }
  func.func @transform_3(%arg0: i32) -> (i32, i32) {
    %c0_i32 = arith.constant 0 : i32
    %c0_i32_0 = arith.constant 0 : i32
    %c0_i32_1 = arith.constant 0 : i32
    return %c0_i32, %c0_i32_0 : i32, i32
  }
  func.func @transform_4(%arg0: i32) -> (i32, i32, i32, i32) {
    %c0_i32 = arith.constant 0 : i32
    %c0_i32_0 = arith.constant 0 : i32
    %c0_i32_1 = arith.constant 0 : i32
    %c0_i32_2 = arith.constant 0 : i32
    %c0_i32_3 = arith.constant 0 : i32
    return %c0_i32, %c0_i32_0, %c0_i32_1, %c0_i32_2 : i32, i32, i32, i32
  }
  func.func @transform_5(%arg0: i32) -> (i32, i32, i32, i32) {
    %c0_i32 = arith.constant 0 : i32
    %c0_i32_0 = arith.constant 0 : i32
    %c0_i32_1 = arith.constant 0 : i32
    %c0_i32_2 = arith.constant 0 : i32
    %c0_i32_3 = arith.constant 0 : i32
    return %c0_i32, %c0_i32_0, %c0_i32_1, %c0_i32_2 : i32, i32, i32, i32
  }
  func.func @transform_6(%arg0: i32) -> (i32, i32, i32) {
    %c0_i32 = arith.constant 0 : i32
    %c0_i32_0 = arith.constant 0 : i32
    %c0_i32_1 = arith.constant 0 : i32
    %c0_i32_2 = arith.constant 0 : i32
    return %c0_i32, %c0_i32_0, %c0_i32_1 : i32, i32, i32
  }
}

</mosaic_0001>

<bundles_post_ra>
// kernel: encoderblock_forward.1
= control target key start
LH: loop header
LB: loop body
LE: loop exit
PB: predicated region body
PF: predicated region fallthrough
CT: control target
= control target key end

     0   :  { %s993_s23 = smov 1   ;;  %s1202_s0 = inlined_call_operand.vmem [shape: f32[2,4,16], index: 0, kind: input, shape index: {}]   ;;  %s1203_s1 = inlined_call_operand.vmem [shape: f32[34,16], index: 1, kind: input, shape index: {}]   ;;  %s1204_s2 = inlined_call_operand.vmem [shape: f32[3,8,4], index: 2, kind: input, shape index: {}]   ;;  %s1205_s3 = inlined_call_operand.vmem [shape: f32[8,1], index: 3, kind: input, shape index: {}]   ;;  %s1206_s4 = inlined_call_operand.vmem [shape: f32[2,2,8,24], index: 4, kind: input, shape index: {}]   ;;  %s1207_s5 = inlined_call_operand.vmem [shape: f32[2,2,8,1], index: 5, kind: input, shape index: {}]   ;;  %s1208_s6 = inlined_call_operand.hbm [shape: f32[2,8,8], index: 6, kind: output, shape index: {}]  }
   0x1   :  { %v24_v0 = vld [vmem:[%s1202_s0] sm:$0xf]  ;;  %v811_v1 = vld [vmem:[%s1202_s0 + $0x4] sm:$0xf] }
   0x2   :  { %28 = vrot.lane.b32.xlu0 %v24_v0, %s993_s23 }
   0x3   :  { %11 = vsyncpa [#allocation3], 0  ;;  %v994_v2 = vmov 0.0   ;;  %s995_s26 = smov 19   ;;  %vm996_vm0 = vmmov 0   ;;  %vm35_vm1 = vcmask 7168  }
   0x4   :  { %864 = vmatprep.subr.mxu0 %v994_v2  ;;  %866 = vmatprep.mubr.msk.f32.mxu0 %vm996_vm0, %v994_v2  ;;  %vm37_vm2 = vcmask 138240   ;;  %vm39_vm3 = vcmask 146432   ;;  %vm41_vm4 = vcmask 154624   ;;  %vm43_vm5 = vcmask 285696   ;;  %s997_s0 = smov 127   ;;  %s998_s27 = smov 126  }
   0x5   :  { %889 = vmatprep.mubr.msk.f32.mxu1 %vm996_vm0, %v994_v2  ;;  %v283_v10 = vld [vmem:[%s1203_s1] sm:$0xff]  ;;  %v284_v11 = vld [vmem:[%s1203_s1 + $0x8] sm:$0xff]  ;;  %v285_v12 = vld [vmem:[%s1203_s1 + $0x10] sm:$0xff]  ;;  %v999_v13 = vmov 0.0|0.0   ;;  %vm55_vm6 = vcmask 1043456   ;;  %vm51_vm7 = vcmask 31744  }
   0x6   :  { %32 = vrot.lane.b32.xlu0 %v811_v1, %s995_s26  ;;  %928 = vmatprep.subr.bf16.mxu1 %v999_v13  ;;  %v929_v14 = vpack.c.bf16 %v284_v11, %v283_v10  ;;  %v286_v15 = vld [vmem:[%s1203_s1 + $0x18] sm:$0xff]  ;;  %v812_v17 = vld [vmem:[%s1204_s2 + $0x8] sm:$0xff]  ;;  %v45_v19 = vld [vmem:[%s1204_s2] sm:$0xff]  ;;  %vm298_vm8 = vcmask 1041408   ;;  %v1000_v24 = vmov 0   ;;  %vm294_vm9 = vcmask 277504  }
   0x7   :  { %v932_v16 = vpack.c.bf16 %v286_v15, %v285_v12  ;;  %v817_v21 = vld [vmem:[%s1204_s2 + $0x10] sm:$0xff]  ;;  %v287_v22 = vld [vmem:[%s1203_s1 + $0x20] sm:$0x3]  ;;  %968 = vset.pattern.permute.xlu0 %v1000_v24  ;;  %s1001_s1 = smov 3   ;;  %vm380_vm10 = vcmask 72704   ;;  %vm382_vm11 = vcmask 80896  }
   0x8   :  { %930 = vmatpush3.bf16.msra.mxu1 %v929_v14  ;;  %v288_v23 = vld [vmem:[%s1205_s3] sm:$0xff]  ;;  %vm384_vm12 = vcmask 89088   ;;  %vm1002_vm13 = vmmov 1   ;;  %vm401_vm15 = vcmask 195584   ;;  %v825_v55 = vld [vmem:[%s1207_s5 + $0x8] sm:$0xff]  ;;  %v828_v12 = vld [vmem:[%s1206_s4 + $0x10] sm:$0xff] }
   0x9   :  { %931 = vmatprep.subr.bf16.mxu1 %v999_v13  ;;  %v395_v38 = vld [vmem:[%s1207_s5] sm:$0xff]  ;;  %vm1112_vm14 = vmpackc.low %vm1002_vm13, %vm41_vm4  ;;  %v824_v58 = vld [vmem:[%s1206_s4 + $0x8] sm:$0xff] }
   0xa   :  { %291 = vperm.xlu0 %968, %v288_v23   ;;  %v394_v42 = vld [vmem:[%s1206_s4] sm:$0xff] }
   0xc   :  { %933 = vmatpush3.bf16.msra.mxu1 %v932_v16 }
   0xd   :  { %887 = vmatprep.subr.mxu1 %v994_v2 }
  0x10   :  { %888 = vmatpush3.msk.msra.mxu1 %vm298_vm8, %v287_v22 }
  0x11   :  { %938 = vmatprep.subr.bf16.mxu1 %v999_v13 }
  0x74   :  { %v29_v3 = vpop.permute.xlu0 %28 }
  0x75   :  { %v36_v4 = vsel %vm35_vm1, 0.0, %v29_v3 }
  0x76   :  { %v38_v5 = vsel %vm37_vm2, %v36_v4, 0.0 }
  0x77   :  { %v40_v6 = vsel %vm39_vm3, %v38_v5, 0.0 }
  0x78   :  { %v33_v7 = vpop.permute.xlu0 %32 }
  0x79   :  { %v42_v8 = vsel %vm41_vm4, %v40_v6, %v33_v7 }
  0x7a   :  { %v44_v9 = vsel %vm43_vm5, %v42_v8, 0.0 }
  0x7b   :  { %49 = vrot.lane.b32.xlu1 %v44_v9, %s997_s0 }
  0x7f   :  { %205 = vrot.lane.b32.xlu1 %v44_v9, %s998_s27 }
  0x89   :  { %v292_v27 = vpop.permute.xlu0 %291 }
  0xed   :  { %v50_v18 = vpop.permute.xlu1 %49 }
  0xee   :  { %865 = vmatpush3.msk.msra.mxu0 %vm55_vm6, %v50_v18 }
  0xef   :  { %867 = vmatmul.mubr.msk.f32.vlgmr.msra.gmra.mrb[0].mxu0 %vm51_vm7, %v812_v17  ;;  %869 = vmatprep.subr.mxu0 %v994_v2 }
  0xf0   :  { %870 = vmatpush3.msk.msra.mxu0 %vm55_vm6, %v44_v9  ;;  %871 = vmatprep.mubr.msk.f32.mxu0 %vm996_vm0, %v994_v2  ;;  %v829_v9 = vld [vmem:[%s1207_s5 + $0x10] sm:$0xff] }
  0xf1   :  { %874 = vmatprep.subr.mxu0 %v994_v2  ;;  %v206_v20 = vpop.permute.xlu1 %205 }
  0xf7   :  { %872 = vmatmul.mubr.msk.f32.vlgmr.msra.gmra.mrb[0].mxu0 %vm51_vm7, %v45_v19 }
  0xf8   :  { %875 = vmatpush3.msk.msra.mxu0 %vm55_vm6, %v206_v20  ;;  %876 = vmatprep.mubr.msk.f32.mxu0 %vm996_vm0, %v994_v2 }
  0xf9   :  { %934 = vmatprep.subr.bf16.mxu0 %v999_v13 }
  0xff   :  { %877 = vmatmul.mubr.msk.f32.vlgmr.msra.gmra.mrb[0].mxu0 %vm51_vm7, %v817_v21 }
 0x100   :  { %898 = vmatprep.mubr.msk.f32.mxu0 %vm996_vm0, %v994_v2 }
 0x1d2   :  { %v278_v25 = vpop.f32.mrb[0].mxu0 }
 0x1d3   :  { %v878_v26 = vpop.f32.mrb[1].mxu0  ;;  %890 = vmatmul.mubr.msk.f32.vlgmr.msra.gmra.mrb[0].mxu1 %vm294_vm9, %v278_v25  ;;  %v833_v25 = vld [vmem:[%s1207_s5 + $0x18] sm:$0xff]  ;;  %s1004_s5 = smov [#allocation2]  }
 0x1d4   :  { %907 = vmatprep.mubr.msk.f32.mxu1 %vm996_vm0, %v994_v2 }
 0x2a6   :  { %v368_v28 = vpop.f32.mrb[0].mxu1 }
 0x2a7   :  { %v369_v29 = vadd.f32 %v368_v28, %v292_v27  ;;  %v891_v30 = vpop.f32.mrb[1].mxu1  ;;  %v832_v28 = vld [vmem:[%s1206_s4 + $0x18] sm:$0xff]  ;;  %s1003_s4 = smov 117  }
 0x2a9   :  { %373 = vrot.lane.b32.xlu1 %v369_v29, %s993_s23 }
 0x2ad   :  { %376 = vrot.lane.b32.xlu1 %v369_v29, %s1001_s1 }
 0x31b   :  { %v374_v31 = vpop.permute.xlu1 %373 }
 0x31c   :  { %v379_v32 = vsel %vm35_vm1, 0.0, %v374_v31 }
 0x31d   :  { %v381_v33 = vsel %vm380_vm10, %v379_v32, 0.0 }
 0x31e   :  { %v383_v34 = vsel %vm382_vm11, %v381_v33, 0.0 }
 0x31f   :  { %v377_v35 = vpop.permute.xlu1 %376 }
 0x320   :  { %v385_v36 = vsel %vm384_vm12, %v383_v34, %v377_v35 }
 0x321   :  { %v386_v37 = vsel %vm41_vm4, %v385_v36, 0.0 }
 0x322   :  { %391 = vrot.lane.b32.xlu1 %v386_v37, %s998_s27  ;;  %388 = vrot.lane.b32.xlu0 %v386_v37, %s997_s0 }
 0x326   :  { %398 = vperm.xlu0 %968, %v395_v38  }
 0x394   :  { %v389_v39 = vpop.permute.xlu0 %388  ;;  %v392_v43 = vpop.permute.xlu1 %391 }
 0x395   :  { %v935_v41 = vpack.c.bf16 %v389_v39, %v385_v36 }
 0x397   :  { %937 = vmatpush3.bf16.msk.msra.mxu0 %vm1112_vm14, %v935_v41 }
 0x398   :  { %896 = vmatprep.subr.mxu0 %v994_v2 }
 0x39b   :  { %897 = vmatpush3.msra.mxu0 %v392_v43 }
 0x39c   :  { %899 = vmatmul.mubr.msk.f32.vlgmr.msra.gmra.mrb[2].mxu0 %vm401_vm15, %v394_v42  ;;  %942 = vmatprep.subr.bf16.mxu0 %v999_v13 }
 0x39d   :  { %916 = vmatprep.mubr.msk.f32.mxu0 %vm996_vm0, %v994_v2 }
 0x3a5   :  { %v399_v44 = vpop.permute.xlu0 %398 }
 0x46f   :  { %v471_v45 = vpop.f32.mrb[2].mxu0 }
 0x470   :  { %v472_v46 = vadd.f32 %v471_v45, %v399_v44  ;;  %v900_v47 = vpop.f32.mrb[3].mxu0 }
 0x472   :  { %v475_v48 = vmax.f32 %v472_v46, 0.0 }
 0x474   :  { %477 = vrot.lane.b32.xlu1 %v475_v48, %s993_s23 }
 0x4e6   :  { %v478_v49 = vpop.permute.xlu1 %477 }
 0x4e7   :  { %v480_v50 = vsel %vm35_vm1, 0.0, %v478_v49 }
 0x4e8   :  { %v481_v51 = vsel %vm380_vm10, %v480_v50, 0.0 }
 0x4e9   :  { %v482_v52 = vsel %vm382_vm11, %v481_v51, 0.0 }
 0x4ea   :  { %v483_v53 = vsel %vm384_vm12, %v482_v52, %v478_v49 }
 0x4eb   :  { %v484_v54 = vsel %vm41_vm4, %v483_v53, 0.0 }
 0x4ec   :  { %489 = vrot.lane.b32.xlu1 %v484_v54, %s998_s27  ;;  %486 = vrot.lane.b32.xlu0 %v484_v54, %s997_s0 }
 0x4f0   :  { %498 = vperm.xlu0 %968, %v825_v55  }
 0x55e   :  { %v487_v56 = vpop.permute.xlu0 %486  ;;  %v490_v59 = vpop.permute.xlu1 %489 }
 0x55f   :  { %v939_v57 = vpack.c.bf16 %v487_v56, %v483_v53 }
 0x561   :  { %941 = vmatpush3.bf16.msk.msra.mxu1 %vm1112_vm14, %v939_v57 }
 0x562   :  { %905 = vmatprep.subr.mxu1 %v994_v2 }
 0x565   :  { %906 = vmatpush3.msra.mxu1 %v490_v59 }
 0x566   :  { %908 = vmatmul.mubr.msk.f32.vlgmr.msra.gmra.mrb[2].mxu1 %vm401_vm15, %v824_v58  ;;  %946 = vmatprep.subr.bf16.mxu1 %v999_v13 }
 0x567   :  { %925 = vmatprep.mubr.msk.f32.mxu1 %vm996_vm0, %v994_v2  ;;  %vm788_vm0 = vcmask 64512  }
 0x56f   :  { %v499_v60 = vpop.permute.xlu0 %498 }
 0x639   :  { %v570_v61 = vpop.f32.mrb[2].mxu1 }
 0x63a   :  { %v571_v62 = vadd.f32 %v570_v61, %v499_v60  ;;  %v909_v63 = vpop.f32.mrb[3].mxu1 }
 0x63c   :  { %v574_v0 = vmax.f32 %v571_v62, 0.0 }
 0x63e   :  { %v575_v1 = vadd.f32 %v574_v0, %v389_v39 }
 0x640   :  { %577 = vrot.lane.b32.xlu1 %v575_v1, %s993_s23 }
 0x6b2   :  { %v578_v3 = vpop.permute.xlu1 %577 }
 0x6b3   :  { %v580_v4 = vsel %vm35_vm1, 0.0, %v578_v3 }
 0x6b4   :  { %v581_v5 = vsel %vm380_vm10, %v580_v4, 0.0 }
 0x6b5   :  { %v582_v6 = vsel %vm382_vm11, %v581_v5, 0.0 }
 0x6b6   :  { %v583_v7 = vsel %vm384_vm12, %v582_v6, %v578_v3 }
 0x6b7   :  { %v584_v8 = vsel %vm41_vm4, %v583_v7, 0.0 }
 0x6b8   :  { %589 = vrot.lane.b32.xlu1 %v584_v8, %s998_s27  ;;  %586 = vrot.lane.b32.xlu0 %v584_v8, %s997_s0 }
 0x6bc   :  { %598 = vperm.xlu0 %968, %v829_v9  }
 0x72a   :  { %v587_v10 = vpop.permute.xlu0 %586  ;;  %v590_v13 = vpop.permute.xlu1 %589 }
 0x72b   :  { %v943_v11 = vpack.c.bf16 %v587_v10, %v583_v7 }
 0x72d   :  { %945 = vmatpush3.bf16.msk.msra.mxu0 %vm1112_vm14, %v943_v11 }
 0x72e   :  { %914 = vmatprep.subr.mxu0 %v994_v2 }
 0x731   :  { %915 = vmatpush3.msra.mxu0 %v590_v13 }
 0x732   :  { %917 = vmatmul.mubr.msk.f32.vlgmr.msra.gmra.mrb[4].mxu0 %vm401_vm15, %v828_v12 }
 0x73b   :  { %v599_v14 = vpop.permute.xlu0 %598 }
 0x805   :  { %v670_v15 = vpop.f32.mrb[4].mxu0 }
 0x806   :  { %v671_v16 = vadd.f32 %v670_v15, %v599_v14  ;;  %v918_v17 = vpop.f32.mrb[5].mxu0 }
 0x808   :  { %v674_v18 = vmax.f32 %v671_v16, 0.0 }
 0x80a   :  { %676 = vrot.lane.b32.xlu1 %v674_v18, %s993_s23 }
 0x87c   :  { %v677_v19 = vpop.permute.xlu1 %676 }
 0x87d   :  { %v679_v20 = vsel %vm35_vm1, 0.0, %v677_v19 }
 0x87e   :  { %v680_v21 = vsel %vm380_vm10, %v679_v20, 0.0 }
 0x87f   :  { %v681_v22 = vsel %vm382_vm11, %v680_v21, 0.0 }
 0x880   :  { %v682_v23 = vsel %vm384_vm12, %v681_v22, %v677_v19 }
 0x881   :  { %v683_v24 = vsel %vm41_vm4, %v682_v23, 0.0 }
 0x882   :  { %688 = vrot.lane.b32.xlu1 %v683_v24, %s998_s27  ;;  %685 = vrot.lane.b32.xlu0 %v683_v24, %s997_s0  ;;  %s800_s27 = sshll.u32 %s1004_s5, 4  ;;  %s801_s27 = int_to_ptr.vmem [resolvable:$true] %s800_s27 }
 0x883   :  { %p974_p1 = scmp.lt.s32.totalorder %s801_s27, %s801_s27 }
 0x886   :  { %697 = vperm.xlu0 %968, %v833_v25  }
 0x8f4   :  { %v686_v26 = vpop.permute.xlu0 %685  ;;  %v689_v29 = vpop.permute.xlu1 %688 }
 0x8f5   :  { %v947_v27 = vpack.c.bf16 %v686_v26, %v682_v23 }
 0x8f7   :  { %949 = vmatpush3.bf16.msk.msra.mxu1 %vm1112_vm14, %v947_v27 }
 0x8f8   :  { %923 = vmatprep.subr.mxu1 %v994_v2 }
 0x8fb   :  { %924 = vmatpush3.msra.mxu1 %v689_v29 }
 0x8fc   :  { %926 = vmatmul.mubr.msk.f32.vlgmr.msra.gmra.mrb[4].mxu1 %vm401_vm15, %v832_v28 }
 0x905   :  { %v698_v30 = vpop.permute.xlu0 %697 }
 0x9cf   :  { %v769_v31 = vpop.f32.mrb[4].mxu1 }
 0x9d0   :  { %v770_v32 = vadd.f32 %v769_v31, %v698_v30  ;;  %v927_v33 = vpop.f32.mrb[5].mxu1 }
 0x9d2   :  { %v773_v34 = vmax.f32 %v770_v32, 0.0 }
 0x9d4   :  { %v774_v35 = vadd.f32 %v773_v34, %v587_v10 }
 0x9d6   :  { %776 = vrot.lane.b32.xlu1 %v774_v35, %s993_s23  ;;  %s969_s23 = scalar_lea.vmem %s801_s27, 256 }
 0x9d7   :  { %p970_p0 = scmp.ne.s32.totalorder %s801_s27, %s969_s23  ;;  %p975_p2 = scmp.lt.s32.totalorder %s969_s23, %s969_s23 }
 0x9d9   :  { %p976_p3 = por %p975_p2, %p974_p1 }
 0x9db   :  { %p977_p4 = pnand %p976_p3, %p970_p0 }
 0xa48   :  { %v777_v36 = vpop.permute.xlu1 %776 }
 0xa49   :  { %v779_v37 = vsel %vm35_vm1, 0.0, %v777_v36 }
 0xa4a   :  { %v780_v2 = vsel %vm380_vm10, %v779_v37, 0.0 }
 0xa4b   :  { %v781_v38 = vsel %vm382_vm11, %v780_v2, 0.0 }
 0xa4c   :  { %v782_v39 = vsel %vm384_vm12, %v781_v38, %v777_v36 }
 0xa4d   :  { %v783_v40 = vsel %vm41_vm4, %v782_v39, 0.0 }
 0xa4e   :  { %790 = vrot.lane.b32.xlu1 %v783_v40, %s1003_s4  ;;  %785 = vrot.lane.b32.xlu0 %v783_v40, %s997_s0 }
 0xac0   :  { %v791_v41 = vpop.permute.xlu1 %790  ;;  %v786_v42 = vpop.permute.xlu0 %785 }
 0xac1   :  { %794 = vst.msk [vmem:[#allocation2 + $0x8] sm:$0xff] %vm788_vm0, %v791_v41  ;;  %789 = vst.msk [vmem:[#allocation2] sm:$0xff] %vm788_vm0, %v786_v42 }
 0xac2   :  { %980 = shalt.err (!%p977_p4)
}
 0xac3   :  { %s981_s16 = scalar_lea.hbm %s1208_s6, 256 }
 0xac4   :  { %p982_p5 = scmp.ne.s32.totalorder %s1208_s6, %s981_s16  ;;  %p985_p6 = scmp.lt.u32.totalorder %s981_s16, %s1208_s6 }
 0xac6   :  { %p987_p7 = pnand %p985_p6, %p982_p5 }
 0xac8   :  { %990 = shalt.err (!%p987_p7)
}
 0xac9   :  { %s1005_s20 = smov 128   ;;  %s1006_s21 = smov 8  }
 0xaca   :  { %806 = dma.vmem_to_hbm [thread:$0]  %s801_s27, 256, %s1208_s6, [#allocation3], %s1005_s20, %s1005_s20, %s1006_s21  }
 0xacb   :  { %991 = dma.done.wait [#allocation3], 256  }
 0xacc   :  { %992 = vsyncadd [#allocation3], 4294967040 }
 0xacd   :  { %810 = vsyncpa [#allocation3], 1 }

</bundles_post_ra>
